<compile_context>
chip_gen: v7x
topology: tpu7x:2x2x1
jax: 0.10.0
libtpu: 0.0.40
codegen_flags: <defaults>
</compile_context>

<pallas_src>
import jax
import jax.numpy as jnp
from jax.experimental import pallas as pl
from jax.experimental.pallas import tpu as pltpu

GRIDSIZE = 11
ARRAYWIDTH = 16
IN_FEATURES = GRIDSIZE * 2 * ARRAYWIDTH * 2   # 704
OUT_FEATURES = 3
OUT_PADDED = 128          # lane-dense output slab (full unmasked stores)
MAX_TB = 4096             # max batch-tile rows; f32 x block ~11 MiB, 2x buffered ~22 MiB
MIN_SPLIT = 1024          # once B >= this, force >= 2 grid steps (v7x megacore)


def linear_relu_kernel(x_ref, w_ref, b_ref, o_ref):
    # x_ref: (tb, 704) f32   w_ref: (704, 128) f32
    # b_ref: (1, 128)  f32   o_ref: (tb, 128)  bf16
    acc = jnp.dot(x_ref[...], w_ref[...], preferred_element_type=jnp.float32)
    acc = acc + b_ref[...]                                    # bias broadcast, f32
    o_ref[...] = jnp.maximum(acc, 0.0).astype(o_ref.dtype)    # ReLU, store bf16


def _round_up(n, m):
    return ((n + m - 1) // m) * m


def _choose_tb(batch):
    """Batch tile: multiple of 16 (bf16 output rows), capped at MAX_TB, and
    >= 2 grid steps for large batches so megacore can shard the batch axis."""
    if batch <= 16:
        return 16
    n_tiles = pl.cdiv(batch, MAX_TB)
    if n_tiles < 2 and batch >= MIN_SPLIT:
        n_tiles = 2
    return min(MAX_TB, _round_up(pl.cdiv(batch, n_tiles), 16))


def prepare_params(weight, bias):
    """One-time parameter prep (hoisted out of the per-call path).

    PyTorch (3, 704) weight -> lane-dense (704, 128) f32 slab; bias -> (1, 128) f32.
    """
    w_pad = jnp.zeros((IN_FEATURES, OUT_PADDED), jnp.float32)
    w_pad = w_pad.at[:, :OUT_FEATURES].set(weight.T.astype(jnp.float32))
    b_pad = jnp.zeros((1, OUT_PADDED), jnp.float32)
    b_pad = b_pad.at[0, :OUT_FEATURES].set(bias.astype(jnp.float32))
    return w_pad, b_pad


def baseline_ann_forward_prepared(x, w_pad, b_pad):
    """x: (B, 704) f32; w_pad: (704, 128) f32; b_pad: (1, 128) f32 -> (B, 3) f32."""
    B = x.shape[0]
    tb = _choose_tb(B)
    grid = (pl.cdiv(B, tb),)   # ragged last block masked by Pallas — no jnp.pad pass

    cost = pl.CostEstimate(
        flops=2 * B * IN_FEATURES * OUT_PADDED,
        transcendentals=0,
        bytes_accessed=(B * IN_FEATURES * 4             # x (f32, dominant stream)
                        + IN_FEATURES * OUT_PADDED * 4  # weight slab (f32, resident)
                        + OUT_PADDED * 4                # bias
                        + B * OUT_PADDED * 2),          # output (bf16)
    )

    out_padded = pl.pallas_call(
        linear_relu_kernel,
        out_shape=jax.ShapeDtypeStruct((B, OUT_PADDED), jnp.bfloat16),
        grid=grid,
        in_specs=[
            pl.BlockSpec((tb, IN_FEATURES), lambda i: (i, 0)),          # x: streamed
            pl.BlockSpec((IN_FEATURES, OUT_PADDED), lambda i: (0, 0)),  # weight: resident
            pl.BlockSpec((1, OUT_PADDED), lambda i: (0, 0)),            # bias: resident
        ],
        out_specs=pl.BlockSpec((tb, OUT_PADDED), lambda i: (i, 0)),
        compiler_params=pltpu.CompilerParams(
            dimension_semantics=("parallel",),   # shard batch tiles across TCs (v7x)
            vmem_limit_bytes=32 << 20,
        ),
        cost_estimate=cost,
    )(x, w_pad, b_pad)

    # Drop the lane padding; return f32 like the PyTorch module.
    return out_padded[:, :OUT_FEATURES].astype(jnp.float32)


def baseline_ann_forward(x, weight, bias):
    """Convenience wrapper: raw PyTorch-layout params -> prepared -> kernel."""
    w_pad, b_pad = prepare_params(weight, bias)
    return baseline_ann_forward_prepared(x, w_pad, b_pad)


if __name__ == "__main__":
    key = jax.random.PRNGKey(0)
    kx, kw, kb = jax.random.split(key, 3)

    batch = 2
    # Deterministic parameter init mimicking nn.Linear default:
    # uniform(-1/sqrt(fan_in), 1/sqrt(fan_in))
    bound = 1.0 / (IN_FEATURES ** 0.5)
    weight = jax.random.uniform(kw, (OUT_FEATURES, IN_FEATURES),
                                jnp.float32, -bound, bound)
    bias = jax.random.uniform(kb, (OUT_FEATURES,), jnp.float32, -bound, bound)
    x = jax.random.normal(kx, (batch, IN_FEATURES), jnp.float32)

    w_pad, b_pad = prepare_params(weight, bias)      # one-time param prep
    out = baseline_ann_forward_prepared(x, w_pad, b_pad)
    out = jax.block_until_ready(out)

    # Cross-check against a plain-JAX f32 reference (only the final bf16 store
    # rounds; tolerance covers that ~2^-9 relative error).
    ref = jnp.maximum(x @ weight.T + bias, 0.0)
    assert out.shape == (batch, OUT_FEATURES)
    assert jnp.allclose(out, ref, atol=1e-2, rtol=1e-2), (out, ref)

    print("KERNEL_OK")
</pallas_src>

<mosaic_0001>
module attributes {stable_mosaic.version = 11 : i64} {
  func.func @linear_relu_kernel(%arg0: i32, %arg1: memref<16x704xf32, #tpu.memory_space<vmem>>, %arg2: memref<704x128xf32, #tpu.memory_space<vmem>>, %arg3: memref<1x128xf32, #tpu.memory_space<vmem>>, %arg4: memref<16x128xbf16, #tpu.memory_space<vmem>>) attributes {dimension_semantics = [#tpu.dimension_semantics<parallel>], iteration_bounds = array<i64: 1>, scalar_prefetch = 0 : i64, scratch_operands = 0 : i64, tpu.core_type = #tpu.core_type<tc>, window_params = [{transform_indices = @transform_0, window_bounds = array<i64: 16, 704>}, {pipeline_mode = #tpu.pipeline_mode<synchronous>, transform_indices = @transform_1, window_bounds = array<i64: 704, 128>}, {pipeline_mode = #tpu.pipeline_mode<synchronous>, transform_indices = @transform_2, window_bounds = array<i64: 1, 128>}, {transform_indices = @transform_3, window_bounds = array<i64: 16, 128>}]} {
    %c0 = arith.constant 0 : index
    %c0_0 = arith.constant 0 : index
    %0 = vector.load %arg1[%c0, %c0_0] : memref<16x704xf32, #tpu.memory_space<vmem>>, vector<16x704xf32>
    %c0_1 = arith.constant 0 : index
    %c0_2 = arith.constant 0 : index
    %1 = vector.load %arg2[%c0_1, %c0_2] : memref<704x128xf32, #tpu.memory_space<vmem>>, vector<704x128xf32>
    %cst = arith.constant dense<0.000000e+00> : vector<16x128xf32>
    %2 = tpu.matmul %0, %1, %cst {dimension_numbers = #tpu.dot_dimension_numbers<[1], [0], [0], [1], [0, 0, 1, 1], [], []>} : vector<16x704xf32>, vector<704x128xf32>, vector<16x128xf32> -> vector<16x128xf32>
    %c0_3 = arith.constant 0 : index
    %c0_4 = arith.constant 0 : index
    %3 = vector.load %arg3[%c0_3, %c0_4] : memref<1x128xf32, #tpu.memory_space<vmem>>, vector<1x128xf32>
    %4 = vector.broadcast %3 : vector<1x128xf32> to vector<16x128xf32>
    %5 = arith.addf %2, %4 : vector<16x128xf32>
    %cst_5 = arith.constant 0.000000e+00 : f32
    %6 = vector.broadcast %cst_5 : f32 to vector<16x128xf32>
    %7 = arith.maximumf %5, %6 : vector<16x128xf32>
    %8 = arith.truncf %7 : vector<16x128xf32> to vector<16x128xbf16>
    %c0_6 = arith.constant 0 : index
    %c0_7 = arith.constant 0 : index
    %9 = vector.load %arg4[%c0_6, %c0_7] : memref<16x128xbf16, #tpu.memory_space<vmem>>, vector<16x128xbf16>
    tpu.vector_store %arg4[%c0_6, %c0_7], %8 {strides = array<i32>} : memref<16x128xbf16, #tpu.memory_space<vmem>>, vector<16x128xbf16>,
    return
  }
  func.func @transform_0(%arg0: i32) -> (i32, i32) {
    %c0_i32 = arith.constant 0 : i32
    %c0_i32_0 = arith.constant 0 : i32
    return %arg0, %c0_i32 : i32, i32
  }
  func.func @transform_1(%arg0: i32) -> (i32, i32) {
    %c0_i32 = arith.constant 0 : i32
    %c0_i32_0 = arith.constant 0 : i32
    %c0_i32_1 = arith.constant 0 : i32
    return %c0_i32, %c0_i32_0 : i32, i32
  }
  func.func @transform_2(%arg0: i32) -> (i32, i32) {
    %c0_i32 = arith.constant 0 : i32
    %c0_i32_0 = arith.constant 0 : i32
    %c0_i32_1 = arith.constant 0 : i32
    return %c0_i32, %c0_i32_0 : i32, i32
  }
  func.func @transform_3(%arg0: i32) -> (i32, i32) {
    %c0_i32 = arith.constant 0 : i32
    %c0_i32_0 = arith.constant 0 : i32
    return %arg0, %c0_i32 : i32, i32
  }
}

</mosaic_0001>

<bundles_post_ra>
// kernel: tpu_custom_call.1
= control target key start
LH: loop header
LB: loop body
LE: loop exit
PB: predicated region body
PF: predicated region fallthrough
CT: control target
= control target key end

     0   :  { %8 = vsyncpa [#allocation3], 0  ;;  %s1016_s0 = inlined_call_operand.hbm [shape: f32[2,704], index: 0, kind: input, shape index: {}]   ;;  %s1017_s1 = inlined_call_operand.hbm [shape: f32[704,128], index: 1, kind: input, shape index: {}]   ;;  %s1018_s2 = inlined_call_operand.vmem [shape: f32[1,128], index: 2, kind: input, shape index: {}]   ;;  %s1019_s3 = inlined_call_operand.hbm [shape: bf16[2,128], index: 3, kind: output, shape index: {}]  }
   0x1   :  { %9 = vsyncpa [#allocation6], 0 }
   0x2   :  { %10 = vsyncpa [#allocation4], 0 }
   0x3   :  { %15 = vsyncadd [#allocation3], 1344  ;;  %s889_s12 = smov [#allocation2]   ;;  %s817_s16 = scalar_lea.hbm %s1016_s0, 192 }
   0x4   :  { %s16_s13 = sshll.u32 %s889_s12, 4  ;;  %p818_p0 = scmp.ne.s32.totalorder %s1016_s0, %s817_s16  ;;  %s17_s13 = int_to_ptr.vmem [resolvable:$true] %s16_s13 }
   0x5   :  { %p821_p1 = scmp.lt.u32.totalorder %s817_s16, %s1016_s0 }
   0x7   :  { %p823_p2 = pnand %p821_p1, %p818_p0 }
   0x9   :  { %826 = shalt.err (!%p823_p2)
}
   0xa   :  { %s827_s21 = scalar_lea.vmem %s17_s13, 192  ;;  %s831_s22 = scalar_lea.vmem %s17_s13, 1536 }
   0xb   :  { %p828_p3 = scmp.ne.s32.totalorder %s17_s13, %s827_s21  ;;  %p832_p4 = scmp.lt.s32.totalorder %s17_s13, %s17_s13 }
   0xc   :  { %p833_p5 = scmp.lt.s32.totalorder %s831_s22, %s827_s21 }
   0xe   :  { %p834_p6 = por %p833_p5, %p832_p4 }
  0x10   :  { %p835_p7 = pnand %p834_p6, %p828_p3 }
  0x12   :  { %838 = shalt.err (!%p835_p7)
}
  0x13   :  { %s890_s23 = smov 192   ;;  %s891_s24 = smov 12  }
  0x14   :  { %22 = dma.hbm_to_vmem [thread:$0]  %s1016_s0, 192, %s17_s13, [#allocation3], %s890_s23, %s890_s23, %s891_s24  }
  0x15   :  { %s892_s27 = smov [#allocation5]   ;;  %s839_s4 = scalar_lea.hbm %s1017_s1, 11264 }
  0x16   :  { %s28_s28 = sshll.u32 %s892_s27, 4  ;;  %p840_p8 = scmp.ne.s32.totalorder %s1017_s1, %s839_s4  ;;  %s29_s28 = int_to_ptr.vmem [resolvable:$true] %s28_s28 }
  0x17   :  { %p843_p9 = scmp.lt.u32.totalorder %s839_s4, %s1017_s1 }
  0x19   :  { %p845_p10 = pnand %p843_p9, %p840_p8 }
  0x1b   :  { %848 = shalt.err (!%p845_p10)
}
  0x1c   :  { %s849_s9 = scalar_lea.vmem %s29_s28, 11264  ;;  %p854_p12 = scmp.lt.s32.totalorder %s29_s28, %s29_s28 }
  0x1d   :  { %p850_p11 = scmp.ne.s32.totalorder %s29_s28, %s849_s9  ;;  %p855_p13 = scmp.lt.s32.totalorder %s849_s9, %s849_s9 }
  0x1f   :  { %p856_p0 = por %p855_p13, %p854_p12 }
  0x21   :  { %p857_p1 = pnand %p856_p0, %p850_p11 }
  0x23   :  { %860 = shalt.err (!%p857_p1)
}
  0x24   :  { %s893_s0 = smov 128   ;;  %s894_s10 = smov 8  }
  0x25   :  { %34 = dma.hbm_to_vmem [thread:$0]  %s1017_s1, 11264, %s29_s28, [#allocation6], %s893_s0, %s893_s0, %s894_s10  }
  0x26   :  { %883 = dma.done.wait [#allocation3], 1536  }
  0x27   :  { %884 = vsyncadd [#allocation3], 4294965760 }
  0x28   :  { %885 = dma.done.wait [#allocation6], 11264  }
  0x29   :  { %886 = vsyncadd [#allocation6], 4294956032  ;;  %v895_v0 = vmov 0.0|0.0   ;;  %v75_v1 = vld [vmem:[#allocation5 + $0x80] sm:$0xff]  ;;  %v76_v2 = vld [vmem:[#allocation5 + $0x88] sm:$0xff]  ;;  %v177_v17 = vlaneseq  ;;  %vm288_vm0 = vcmask 523264  }
  0x2a   :  { %753 = vmatprep.subr.bf16.mxu0 %v895_v0  ;;  %v59_v3 = vld [vmem:[#allocation5] sm:$0xff]  ;;  %v689_v4 = vpack.c.bf16 %v76_v2, %v75_v1  ;;  %v60_v5 = vld [vmem:[#allocation5 + $0x8] sm:$0xff]  ;;  %v77_v6 = vld [vmem:[#allocation5 + $0x90] sm:$0xff]  ;;  %v896_v15 = vmov 1983009808  }
  0x2b   :  { %v78_v7 = vld [vmem:[#allocation5 + $0x98] sm:$0xff]  ;;  %v691_v8 = vpack.c.bf16 %v60_v5, %v59_v3  ;;  %v61_v10 = vld [vmem:[#allocation5 + $0x10] sm:$0xff]  ;;  %v79_v12 = vld [vmem:[#allocation5 + $0xa0] sm:$0xff]  ;;  %v175_v16 = vunpack.c.l.s4 %v896_v15  ;;  %v946_v27 = vshrl.u32 %v177_v17, 7 }
  0x2c   :  { %v693_v9 = vpack.c.bf16 %v78_v7, %v77_v6  ;;  %v62_v11 = vld [vmem:[#allocation5 + $0x18] sm:$0xff]  ;;  %690 = vmatprep.subr.bf16.mxu1 %v689_v4  ;;  %v80_v13 = vld [vmem:[#allocation5 + $0xa8] sm:$0xff]  ;;  %v63_v19 = vld [vmem:[#allocation5 + $0x20] sm:$0xff] }
  0x2d   :  { %692 = vmatpush3.bf16.msra.mxu1 %v691_v8  ;;  %v695_v14 = vpack.c.bf16 %v62_v11, %v61_v10  ;;  %v697_v18 = vpack.c.bf16 %v80_v13, %v79_v12  ;;  %v64_v20 = vld [vmem:[#allocation5 + $0x28] sm:$0xff]  ;;  %v81_v21 = vld [vmem:[#allocation5 + $0xb0] sm:$0xff]  ;;  %v82_v22 = vld [vmem:[#allocation5 + $0xb8] sm:$0xff]  ;;  %v176_v26 = vunpack.c.0.s8 %v175_v16 }
  0x2e   :  { %694 = vmatprep.subr.bf16.mxu1 %v693_v9  ;;  %v699_v23 = vpack.c.bf16 %v64_v20, %v63_v19  ;;  %v123_v24 = vld [vmem:[#allocation5 + $0x200] sm:$0xff]  ;;  %v124_v25 = vld [vmem:[#allocation5 + $0x208] sm:$0xff]  ;;  %v701_v28 = vpack.c.bf16 %v82_v22, %v81_v21  ;;  %v65_v29 = vld [vmem:[#allocation5 + $0x30] sm:$0xff] }
  0x2f   :  { %v66_v30 = vld [vmem:[#allocation5 + $0x38] sm:$0xff]  ;;  %v83_v31 = vld [vmem:[#allocation5 + $0xc0] sm:$0xff]  ;;  %v754_v32 = vpack.c.bf16 %v124_v25, %v123_v24  ;;  %v84_v33 = vld [vmem:[#allocation5 + $0xc8] sm:$0xff]  ;;  %v950_v43 = vsub.s32 %v176_v26, %v946_v27 }
  0x30   :  { %v125_v34 = vld [vmem:[#allocation5 + $0x210] sm:$0xff]  ;;  %v126_v35 = vld [vmem:[#allocation5 + $0x218] sm:$0xff]  ;;  %v67_v36 = vld [vmem:[#allocation5 + $0x40] sm:$0xff]  ;;  %v703_v39 = vpack.c.bf16 %v66_v30, %v65_v29  ;;  %v705_v44 = vpack.c.bf16 %v84_v33, %v83_v31 }
  0x31   :  { %696 = vmatpush3.bf16.msra.mxu1 %v695_v14  ;;  %v68_v37 = vld [vmem:[#allocation5 + $0x48] sm:$0xff]  ;;  %755 = vmatpush1.bf16.msra.mxu0 %v754_v32  ;;  %v757_v38 = vpack.c.bf16 %v126_v35, %v125_v34  ;;  %v85_v40 = vld [vmem:[#allocation5 + $0xd0] sm:$0xff]  ;;  %v127_v41 = vld [vmem:[#allocation5 + $0x220] sm:$0xff] }
  0x32   :  { %698 = vmatprep.subr.bf16.mxu1 %v697_v18  ;;  %756 = vmatprep.subr.bf16.mxu0 %v895_v0  ;;  %v128_v42 = vld [vmem:[#allocation5 + $0x228] sm:$0xff]  ;;  %v86_v45 = vld [vmem:[#allocation5 + $0xd8] sm:$0xff]  ;;  %v707_v49 = vpack.c.bf16 %v68_v37, %v67_v36  ;;  %v129_v52 = vld [vmem:[#allocation5 + $0x230] sm:$0xff] }
  0x33   :  { %v801_v46 = vld [vmem:[#allocation2] ss:$12 sps:$4 sm:$0xff]   ;;  %v804_v47 = vld [vmem:[#allocation2 + $0x18] ss:$12 sps:$4 sm:$0xff]   ;;  %v760_v48 = vpack.c.bf16 %v128_v42, %v127_v41  ;;  %v709_v53 = vpack.c.bf16 %v86_v45, %v85_v40  ;;  %v69_v54 = vld [vmem:[#allocation5 + $0x50] sm:$0xff] }
  0x34   :  { %v954_v50 = vrot.slane %v801_v46, %v950_v43  ;;  %v957_v51 = vrot.slane %v804_v47, %v950_v43  ;;  %v70_v55 = vld [vmem:[#allocation5 + $0x58] sm:$0xff]  ;;  %v87_v57 = vld [vmem:[#allocation5 + $0xe0] sm:$0xff]  ;;  %v88_v58 = vld [vmem:[#allocation5 + $0xe8] sm:$0xff] }
  0x35   :  { %700 = vmatpush3.bf16.msra.mxu1 %v699_v23  ;;  %758 = vmatpush1.bf16.msra.mxu0 %v757_v38  ;;  %v130_v56 = vld [vmem:[#allocation5 + $0x238] sm:$0xff]  ;;  %v711_v61 = vpack.c.bf16 %v70_v55, %v69_v54  ;;  %v131_v62 = vld [vmem:[#allocation5 + $0x240] sm:$0xff]  ;;  %v132_v63 = vld [vmem:[#allocation5 + $0x248] sm:$0xff]  ;;  %v713_v1 = vpack.c.bf16 %v88_v58, %v87_v57 }
  0x36   :  { %702 = vmatprep.subr.bf16.mxu1 %v701_v28  ;;  %759 = vmatprep.subr.bf16.mxu0 %v895_v0  ;;  %v203_v59 = vcombine.high %v954_v50, %v957_v51  ;;  %v763_v60 = vpack.c.bf16 %v130_v56, %v129_v52  ;;  %v71_v2 = vld [vmem:[#allocation5 + $0x60] sm:$0xff]  ;;  %v72_v3 = vld [vmem:[#allocation5 + $0x68] sm:$0xff]  ;;  %v89_v4 = vld [vmem:[#allocation5 + $0xf0] sm:$0xff]  ;;  %v766_v6 = vpack.c.bf16 %v132_v63, %v131_v62 }
  0x37   :  { %v90_v5 = vld [vmem:[#allocation5 + $0xf8] sm:$0xff]  ;;  %v715_v7 = vpack.c.bf16 %v72_v3, %v71_v2  ;;  %v133_v8 = vld [vmem:[#allocation5 + $0x250] sm:$0xff]  ;;  %v107_v13 = vld [vmem:[#allocation5 + $0x180] sm:$0xff]  ;;  %v202_v28 = vcombine.low %v954_v50, %v957_v51 }
  0x38   :  { %357 = vmatprep.mubr.f32.mxu1 %v203_v59  ;;  %v134_v9 = vld [vmem:[#allocation5 + $0x258] sm:$0xff]  ;;  %v717_v10 = vpack.c.bf16 %v90_v5, %v89_v4  ;;  %v73_v11 = vld [vmem:[#allocation5 + $0x70] sm:$0xff]  ;;  %v108_v14 = vld [vmem:[#allocation5 + $0x188] sm:$0xff] }
  0x39   :  { %704 = vmatpush3.bf16.msra.mxu1 %v703_v39  ;;  %761 = vmatpush1.bf16.msra.mxu0 %v760_v48  ;;  %v74_v12 = vld [vmem:[#allocation5 + $0x78] sm:$0xff]  ;;  %v803_v15 = vld [vmem:[#allocation2 + $0x4] ss:$12 sps:$4 sm:$0xff]   ;;  %v92_v18 = vld [vmem:[#allocation5 + $0x108] sm:$0xff]  ;;  %v769_v19 = vpack.c.bf16 %v134_v9, %v133_v8  ;;  %v721_v24 = vpack.c.bf16 %v108_v14, %v107_v13 }
  0x3a   :  { %706 = vmatprep.subr.bf16.mxu1 %v705_v44  ;;  %762 = vmatprep.subr.bf16.mxu0 %v895_v0  ;;  %v806_v16 = vld [vmem:[#allocation2 + $0x1c] ss:$12 sps:$4 sm:$0xff]   ;;  %v91_v17 = vld [vmem:[#allocation5 + $0x100] sm:$0xff]  ;;  %v719_v20 = vpack.c.bf16 %v74_v12, %v73_v11  ;;  %v109_v21 = vld [vmem:[#allocation5 + $0x190] sm:$0xff]  ;;  %v970_v41 = vrot.slane %v803_v15, %v950_v43 }
  0x3b   :  { %v135_v22 = vld [vmem:[#allocation5 + $0x260] sm:$0xff]  ;;  %v136_v23 = vld [vmem:[#allocation5 + $0x268] sm:$0xff]  ;;  %v110_v25 = vld [vmem:[#allocation5 + $0x198] sm:$0xff]  ;;  %v723_v31 = vpack.c.bf16 %v92_v18, %v91_v17  ;;  %v973_v42 = vrot.slane %v806_v16, %v950_v43 }
  0x3c   :  { %v807_v26 = vld [vmem:[#allocation2 + $0x30] ss:$12 sps:$4 sm:$0xff]   ;;  %v772_v29 = vpack.c.bf16 %v136_v23, %v135_v22  ;;  %v809_v30 = vld [vmem:[#allocation2 + $0x48] ss:$12 sps:$4 sm:$0xff]   ;;  %v725_v36 = vpack.c.bf16 %v110_v25, %v109_v21  ;;  %v111_v38 = vld [vmem:[#allocation5 + $0x1a0] sm:$0xff] }
  0x3d   :  { %708 = vmatpush3.bf16.msra.mxu1 %v707_v49  ;;  %764 = vmatpush1.bf16.msra.mxu0 %v763_v60  ;;  %v93_v32 = vld [vmem:[#allocation5 + $0x110] sm:$0xff]  ;;  %v138_v34 = vld [vmem:[#allocation5 + $0x278] sm:$0xff]  ;;  %v234_v35 = vrot.slane %v807_v26, %v950_v43  ;;  %v112_v39 = vld [vmem:[#allocation5 + $0x1a8] sm:$0xff]  ;;  %v248_v40 = vrot.slane %v809_v30, %v950_v43  ;;  %v205_v55 = vcombine.high %v970_v41, %v973_v42 }
  0x3e   :  { %710 = vmatprep.subr.bf16.mxu1 %v709_v53  ;;  %765 = vmatprep.subr.bf16.mxu0 %v895_v0  ;;  %v137_v33 = vld [vmem:[#allocation5 + $0x270] sm:$0xff]  ;;  %v94_v37 = vld [vmem:[#allocation5 + $0x118] sm:$0xff]  ;;  %v139_v44 = vld [vmem:[#allocation5 + $0x280] sm:$0xff]  ;;  %v729_v54 = vpack.c.bf16 %v112_v39, %v111_v38 }
  0x3f   :  { %v140_v45 = vld [vmem:[#allocation5 + $0x288] sm:$0xff]  ;;  %v95_v46 = vld [vmem:[#allocation5 + $0x120] sm:$0xff]  ;;  %v775_v48 = vpack.c.bf16 %v138_v34, %v137_v33  ;;  %v257_v49 = vcombine.high %v234_v35, %v248_v40  ;;  %v256_v50 = vcombine.low %v234_v35, %v248_v40  ;;  %v727_v51 = vpack.c.bf16 %v94_v37, %v93_v32  ;;  %v113_v56 = vld [vmem:[#allocation5 + $0x1b0] sm:$0xff] }
  0x40   :  { %v96_v47 = vld [vmem:[#allocation5 + $0x128] sm:$0xff]  ;;  %v114_v57 = vld [vmem:[#allocation5 + $0x1b8] sm:$0xff]  ;;  %v778_v60 = vpack.c.bf16 %v140_v45, %v139_v44  ;;  %v141_v62 = vld [vmem:[#allocation5 + $0x290] sm:$0xff] }
  0x41   :  { %712 = vmatpush3.bf16.msra.mxu1 %v711_v61  ;;  %767 = vmatpush1.bf16.msra.mxu0 %v766_v6  ;;  %v813_v52 = vld [vmem:[#allocation2 + $0x8] ss:$12 sps:$4 sm:$0xff]   ;;  %v814_v53 = vld [vmem:[#allocation2 + $0x20] ss:$12 sps:$4 sm:$0xff]   ;;  %v731_v61 = vpack.c.bf16 %v96_v47, %v95_v46  ;;  %v142_v63 = vld [vmem:[#allocation5 + $0x298] sm:$0xff]  ;;  %v733_v2 = vpack.c.bf16 %v114_v57, %v113_v56 }
  0x42   :  { %714 = vmatprep.subr.bf16.mxu1 %v713_v1  ;;  %768 = vmatprep.subr.bf16.mxu0 %v895_v0  ;;  %v979_v58 = vrot.slane %v813_v52, %v950_v43  ;;  %v982_v59 = vrot.slane %v814_v53, %v950_v43  ;;  %v97_v3 = vld [vmem:[#allocation5 + $0x130] sm:$0xff]  ;;  %v98_v4 = vld [vmem:[#allocation5 + $0x138] sm:$0xff]  ;;  %v115_v5 = vld [vmem:[#allocation5 + $0x1c0] sm:$0xff] }
  0x43   :  { %v116_v6 = vld [vmem:[#allocation5 + $0x1c8] sm:$0xff]  ;;  %v735_v8 = vpack.c.bf16 %v98_v4, %v97_v3  ;;  %v143_v9 = vld [vmem:[#allocation5 + $0x2a0] sm:$0xff]  ;;  %v117_v14 = vld [vmem:[#allocation5 + $0x1d0] sm:$0xff] }
  0x44   :  { %v223_v1 = vcombine.high %v979_v58, %v982_v59  ;;  %v737_v11 = vpack.c.bf16 %v116_v6, %v115_v5  ;;  %v99_v12 = vld [vmem:[#allocation5 + $0x140] sm:$0xff]  ;;  %v100_v13 = vld [vmem:[#allocation5 + $0x148] sm:$0xff]  ;;  %v118_v15 = vld [vmem:[#allocation5 + $0x1d8] sm:$0xff]  ;;  %v222_v37 = vcombine.low %v979_v58, %v982_v59  ;;  %v897_v5 = vmov 1966171168  }
  0x45   :  { %716 = vmatpush3.bf16.msra.mxu1 %v715_v7  ;;  %770 = vmatpush1.bf16.msra.mxu0 %v769_v19  ;;  %v781_v7 = vpack.c.bf16 %v142_v63, %v141_v62  ;;  %v815_v17 = vld [vmem:[#allocation2 + $0x38] ss:$12 sps:$4 sm:$0xff]   ;;  %v816_v18 = vld [vmem:[#allocation2 + $0x50] ss:$12 sps:$4 sm:$0xff]   ;;  %v739_v19 = vpack.c.bf16 %v100_v13, %v99_v12  ;;  %v741_v22 = vpack.c.bf16 %v118_v15, %v117_v14  ;;  %v120_v26 = vld [vmem:[#allocation5 + $0x1e8] sm:$0xff]  ;;  %v524_v6 = vunpack.c.l.s4 %v897_v5 }
  0x46   :  { %718 = vmatprep.subr.bf16.mxu1 %v717_v10  ;;  %771 = vmatprep.subr.bf16.mxu0 %v895_v0  ;;  %v144_v10 = vld [vmem:[#allocation5 + $0x2a8] sm:$0xff]  ;;  %v146_v21 = vld [vmem:[#allocation5 + $0x2b8] sm:$0xff]  ;;  %v101_v23 = vld [vmem:[#allocation5 + $0x150] sm:$0xff]  ;;  %v275_v30 = vrot.slane %v816_v18, %v950_v43 }
  0x47   :  { %606 = vmatprep.mubr.msk.f32.mxu0 %vm288_vm0, %v223_v1  ;;  %v784_v16 = vpack.c.bf16 %v144_v10, %v143_v9  ;;  %v119_v25 = vld [vmem:[#allocation5 + $0x1e0] sm:$0xff]  ;;  %v104_v34 = vld [vmem:[#allocation5 + $0x168] sm:$0xff]  ;;  %v121_v35 = vld [vmem:[#allocation5 + $0x1f0] sm:$0xff]  ;;  %v525_v12 = vunpack.c.0.s8 %v524_v6 }
  0x48   :  { %v745_v32 = vpack.c.bf16 %v120_v26, %v119_v25  ;;  %v103_v33 = vld [vmem:[#allocation5 + $0x160] sm:$0xff]  ;;  %v812_v44 = vld [vmem:[#allocation2 + $0x4c] ss:$12 sps:$4 sm:$0xff]   ;;  %v105_v46 = vld [vmem:[#allocation5 + $0x170] sm:$0xff] }
  0x49   :  { %720 = vmatpush3.bf16.msra.mxu1 %v719_v20  ;;  %773 = vmatpush1.bf16.msra.mxu0 %v772_v29  ;;  %v145_v20 = vld [vmem:[#allocation5 + $0x2b0] sm:$0xff]  ;;  %v268_v29 = vrot.slane %v815_v17, %v950_v43  ;;  %v747_v39 = vpack.c.bf16 %v104_v34, %v103_v33  ;;  %v106_v47 = vld [vmem:[#allocation5 + $0x178] sm:$0xff] }
  0x4a   :  { %722 = vmatprep.subr.bf16.mxu1 %v721_v24  ;;  %774 = vmatprep.subr.bf16.mxu0 %v895_v0  ;;  %v102_v24 = vld [vmem:[#allocation5 + $0x158] sm:$0xff]  ;;  %v811_v40 = vld [vmem:[#allocation2 + $0x34] ss:$12 sps:$4 sm:$0xff]  }
  0x4b   :  { %v277_v38 = vcombine.high %v268_v29, %v275_v30 }
  0x4c   :  { %358 = vmatmul.mubr.f32.vlgmr.msra.gmra.mrb[0].mxu1 %v202_v28  ;;  %v787_v28 = vpack.c.bf16 %v146_v21, %v145_v20 }
  0x4d   :  { %724 = vmatpush3.bf16.msra.mxu1 %v723_v31  ;;  %362 = vmatprep.mubr.f32.mxu1 %v257_v49  ;;  %v743_v31 = vpack.c.bf16 %v102_v24, %v101_v23  ;;  %v241_v49 = vrot.slane %v811_v40, %v950_v43 }
  0x4e   :  { %726 = vmatprep.subr.bf16.mxu1 %v725_v36  ;;  %776 = vmatpush1.bf16.msra.mxu0 %v775_v48  ;;  %v122_v36 = vld [vmem:[#allocation5 + $0x1f8] sm:$0xff]  ;;  %v751_v48 = vpack.c.bf16 %v106_v47, %v105_v46 }
  0x4f   :  { %777 = vmatprep.subr.bf16.mxu0 %v895_v0  ;;  %v749_v45 = vpack.c.bf16 %v122_v36, %v121_v35 }
  0x50   :  { %363 = vmatmul.mubr.f32.gmra.mrb[2].mxu1 %v256_v50  ;;  %v255_v50 = vrot.slane %v812_v44, %v950_v43 }
  0x51   :  { %728 = vmatpush3.bf16.msra.mxu1 %v727_v51  ;;  %432 = vmatprep.mubr.f32.mxu1 %v205_v55  ;;  %v204_v51 = vcombine.low %v970_v41, %v973_v42  ;;  %v605_v41 = vld [vmem:[%s1018_s2] ss:$0 sm:$0xff] }
  0x52   :  { %730 = vmatprep.subr.bf16.mxu1 %v729_v54  ;;  %779 = vmatpush1.bf16.msra.mxu0 %v778_v60  ;;  %v259_v52 = vcombine.high %v241_v49, %v255_v50  ;;  %v258_v53 = vcombine.low %v241_v49, %v255_v50 }
  0x53   :  { %780 = vmatprep.subr.bf16.mxu0 %v895_v0 }
  0x55   :  { %732 = vmatpush3.bf16.msra.mxu1 %v731_v61 }
  0x56   :  { %734 = vmatprep.subr.bf16.mxu1 %v733_v2  ;;  %782 = vmatpush1.bf16.msra.mxu0 %v781_v7 }
  0x57   :  { %783 = vmatprep.subr.bf16.mxu0 %v895_v0 }
  0x59   :  { %736 = vmatpush3.bf16.msra.mxu1 %v735_v8 }
  0x5a   :  { %738 = vmatprep.subr.bf16.mxu1 %v737_v11  ;;  %785 = vmatpush1.bf16.msra.mxu0 %v784_v16  ;;  %v528_v16 = vsub.s32 %v525_v12, %v946_v27 }
  0x5b   :  { %786 = vmatprep.subr.bf16.mxu0 %v895_v0  ;;  %v276_v0 = vcombine.low %v268_v29, %v275_v30 }
  0x5d   :  { %740 = vmatpush3.bf16.msra.mxu1 %v739_v19 }
  0x5e   :  { %742 = vmatprep.subr.bf16.mxu1 %v741_v22  ;;  %788 = vmatpush1.bf16.msra.mxu0 %v787_v28 }
  0x61   :  { %744 = vmatpush3.bf16.msra.mxu1 %v743_v31  ;;  %508 = vmatmul.mubr.f32.vlgmr.msra.gmra.mrb[0].mxu0 %v222_v37 }
  0x62   :  { %746 = vmatprep.subr.bf16.mxu1 %v745_v32  ;;  %607 = vmatprep.mubr.msk.f32.mxu0 %vm288_vm0, %v277_v38 }
  0x65   :  { %748 = vmatpush3.bf16.msra.mxu1 %v747_v39  ;;  %513 = vmatmul.mubr.f32.gmra.mrb[2].mxu0 %v276_v0 }
  0x66   :  { %750 = vmatprep.subr.bf16.mxu1 %v749_v45 }
  0x69   :  { %752 = vmatpush3.bf16.msra.mxu1 %v751_v48 }
  0x6c   :  { %433 = vmatmul.mubr.f32.vlgmr.msra.gmra.mrb[4].mxu1 %v204_v51 }
  0x6d   :  { %437 = vmatprep.mubr.f32.mxu1 %v259_v52 }
  0x70   :  { %438 = vmatmul.mubr.f32.gmra.mrb[6].mxu1 %v258_v53 }
 0x11f   :  { %v645_v54 = vpop.f32.mrb[0].mxu1 }
 0x120   :  { %v646_v55 = vpop.f32.mrb[1].mxu1 }
 0x121   :  { %v647_v56 = vadd.f32 %v646_v55, %v645_v54 }
 0x123   :  { %v648_v57 = vpop.f32.mrb[2].mxu1  ;;  %v360_v1 = vadd.f32 %v647_v56, %v605_v41 }
 0x124   :  { %v649_v58 = vpop.f32.mrb[3].mxu1 }
 0x125   :  { %v650_v59 = vadd.f32 %v649_v58, %v648_v57 }
 0x127   :  { %v365_v8 = vadd.f32 %v650_v59, %v605_v41 }
 0x134   :  { %v509_v60 = vpop.f32.mrb[0].mxu0 }
 0x135   :  { %v511_v61 = vpop.f32.mrb[1].mxu0 }
 0x138   :  { %v514_v43 = vpop.f32.mrb[2].mxu0 }
 0x139   :  { %v516_v62 = vpop.f32.mrb[3].mxu0 }
 0x13f   :  { %v683_v42 = vpop.f32.mrb[4].mxu1 }
 0x140   :  { %v684_v63 = vpop.f32.mrb[5].mxu1 }
 0x141   :  { %v685_v2 = vadd.f32 %v684_v63, %v683_v42 }
 0x143   :  { %v686_v3 = vpop.f32.mrb[6].mxu1  ;;  %v435_v4 = vadd.f32 %v685_v2, %v360_v1 }
 0x144   :  { %v687_v7 = vpop.f32.mrb[7].mxu1 }
 0x145   :  { %v510_v9 = vadd.f32 %v509_v60, %v435_v4  ;;  %v688_v10 = vadd.f32 %v687_v7, %v686_v3 }
 0x147   :  { %v440_v11 = vadd.f32 %v688_v10, %v365_v8  ;;  %v518_v14 = vmax.f32 %v510_v9, 0.0 }
 0x149   :  { %v515_v13 = vadd.f32 %v514_v43, %v440_v11 }
 0x14b   :  { %v519_v15 = vmax.f32 %v515_v13, 0.0 }
 0x14d   :  { %v520_v17 = vpack.c.bf16 %v519_v15, %v518_v14  ;;  %v608_v18 = vpack.c.bf16 %v519_v15, %v519_v15 }
 0x14f   :  { %v529_v19 = vrot.slane %v520_v17, %v528_v16  ;;  %v536_v20 = vrot.slane %v608_v18, %v528_v16 }
 0x151   :  { %v537_v21 = vcombine.high %v529_v19, %v529_v19  ;;  %v538_v22 = vcombine.high %v536_v20, %v536_v20  ;;  %v545_v23 = vrot.slane %v529_v19, %v528_v16  ;;  %v552_v24 = vrot.slane %v536_v20, %v528_v16  ;;  %609 = vst.sshfl [vmem:[#allocation7] sm:$0x1 pattern:$0x73625140] %v529_v19 }
 0x152   :  { %611 = vst.sshfl [vmem:[#allocation7 + $0x4] sm:$0x1 pattern:$0x73625140] %v536_v20 }
 0x153   :  { %v559_v25 = vrot.slane %v537_v21, %v528_v16  ;;  %v566_v26 = vrot.slane %v538_v22, %v528_v16  ;;  %v567_v28 = vcombine.high %v545_v23, %v545_v23  ;;  %v568_v29 = vcombine.high %v552_v24, %v552_v24  ;;  %610 = vst.sshfl [vmem:[#allocation7 + $0x1] sm:$0x1 pattern:$0x73625140] %v537_v21 }
 0x154   :  { %612 = vst.sshfl [vmem:[#allocation7 + $0x5] sm:$0x1 pattern:$0x73625140] %v538_v22 }
 0x155   :  { %v569_v30 = vcombine.high %v559_v25, %v559_v25  ;;  %v570_v31 = vcombine.high %v566_v26, %v566_v26  ;;  %581 = vst [vmem:[#allocation7 + $0x2] sm:$0x1] %v567_v28  ;;  %585 = vst [vmem:[#allocation7 + $0x6] sm:$0x1] %v568_v29 }
 0x157   :  { %582 = vst [vmem:[#allocation7 + $0x3] sm:$0x1] %v569_v30  ;;  %586 = vst [vmem:[#allocation7 + $0x7] sm:$0x1] %v570_v31 }
 0x158   :  { %591 = vsyncadd [#allocation4], 112  ;;  %s898_s2 = smov [#allocation7]  }
 0x159   :  { %s592_s14 = sshll.u32 %s898_s2, 4  ;;  %s593_s14 = int_to_ptr.vmem [resolvable:$true] %s592_s14 }
 0x15a   :  { %s861_s15 = scalar_lea.vmem %s593_s14, 16  ;;  %s865_s16 = scalar_lea.vmem %s593_s14, 128 }
 0x15b   :  { %p862_p2 = scmp.ne.s32.totalorder %s593_s14, %s861_s15  ;;  %p866_p3 = scmp.lt.s32.totalorder %s593_s14, %s593_s14 }
 0x15c   :  { %p867_p4 = scmp.lt.s32.totalorder %s865_s16, %s861_s15 }
 0x15e   :  { %p868_p5 = por %p867_p4, %p866_p3 }
 0x160   :  { %p869_p6 = pnand %p868_p5, %p862_p2 }
 0x162   :  { %872 = shalt.err (!%p869_p6)
}
 0x163   :  { %s873_s19 = scalar_lea.hbm %s1019_s3, 16 }
 0x164   :  { %p874_p7 = scmp.ne.s32.totalorder %s1019_s3, %s873_s19  ;;  %p877_p8 = scmp.lt.u32.totalorder %s873_s19, %s1019_s3 }
 0x166   :  { %p879_p9 = pnand %p877_p8, %p874_p7 }
 0x168   :  { %882 = shalt.err (!%p879_p9)
}
 0x169   :  { %s899_s24 = smov 16   ;;  %s900_s25 = smov 1  }
 0x16a   :  { %598 = dma.vmem_to_hbm [thread:$0]  %s593_s14, 16, %s1019_s3, [#allocation4], %s899_s24, %s899_s24, %s900_s25  }
 0x16b   :  { %887 = dma.done.wait [#allocation4], 128  }
 0x16c   :  { %888 = vsyncadd [#allocation4], 4294967168 }
 0x16d   :  { %602 = vsyncpa [#allocation3], 1 }
 0x16e   :  { %603 = vsyncpa [#allocation6], 1 }
 0x16f   :  { %604 = vsyncpa [#allocation4], 1 }

</bundles_post_ra>
